<compile_context>
chip_gen: v7x
topology: tpu7x:2x2x1
jax: 0.10.0
libtpu: 0.0.40
codegen_flags: <defaults>
</compile_context>

<pallas_src>
import numpy as np
import jax
import jax.numpy as jnp
from jax.experimental import pallas as pl
from jax.experimental.pallas import tpu as pltpu

_HI = jax.lax.Precision.HIGHEST


# ----------------------------------------------------------------------------
# Pallas kernel: out[g, o, h, w] = sum_c weight[o, c] * x[g, c, h, w]
# ----------------------------------------------------------------------------
def conv1x1_kernel(w_ref, x_ref, o_ref):
    # w_ref: (C, C) in SMEM (read as scalars)
    # x_ref: (G, C, t_h, W) in VMEM  -- t_h on sublanes, W on lanes
    # o_ref: (G, C, t_h, W) in VMEM
    C = o_ref.shape[1]
    for o in range(C):                    # static unroll: C*C scalar-bcast FMAs (VPU)
        acc = x_ref[:, 0] * w_ref[o, 0]
        for c in range(1, C):
            acc = acc + x_ref[:, c] * w_ref[o, c]
        o_ref[:, o] = acc


# ----------------------------------------------------------------------------
# Tile selection (generation-aware budgeting)
# ----------------------------------------------------------------------------
def _round_up(x, m):
    return (x + m - 1) // m * m


def _choose_tiles(N, C, H, W, itemsize):
    """Pick (G, t_h): batch items per block and image rows per block."""
    lane_w = _round_up(W, 128)             # lanes actually moved per row (f32 tiling)
    row_bytes = C * lane_w * itemsize      # one image row, all C channels, 1 batch item

    TARGET = 3 * 1024 * 1024    # per-block payload; x4 (in+out, double-buffered) ~12 MiB
    MIN_BLOCK = 512 * 1024      # never shrink below this just to get more grid steps
    MIN_STEPS = 8               # pipeline depth / feed both v7x TensorCores

    # 1) Rows per block: largest multiple of 8 (or all of H) within the target.
    max_rows = max(1, TARGET // row_bytes)
    if max_rows >= H:
        t_h = H
    else:
        t_h = min(H, max(8, (max_rows // 8) * 8))
        if t_h != H and t_h % 8:
            t_h = H                         # (8,128)-rule fallback (only tiny H)

    # 2) Batch items per block: group batches only once a whole image fits.
    if t_h == H:
        G = max(1, min(N, TARGET // max(1, H * row_bytes)))
    else:
        G = 1

    # 3) Prefer >= MIN_STEPS grid steps, but never shrink a block below MIN_BLOCK
    #    (per-step overhead would dominate again).
    def _steps(g, th):
        return pl.cdiv(N, g) * pl.cdiv(H, th)

    def _block_bytes(g, th):
        return g * row_bytes * _round_up(th, 8)

    while _steps(G, t_h) < MIN_STEPS:
        if G > 1:
            cand = ((G + 1) // 2, t_h)
        elif t_h > 8:
            cand = (G, max(8, ((t_h // 2) // 8) * 8))
        else:
            break
        if _block_bytes(*cand) < MIN_BLOCK:
            break
        G, t_h = cand

    return G, t_h


# ----------------------------------------------------------------------------
# pallas_call wrapper
# ----------------------------------------------------------------------------
def conv1x1_pallas(z, weight):
    """z: (N, C, H, W) NCHW; weight: (C, C) (out_ch, in_ch). Returns (N, C, H, W)."""
    N, C, H, W = z.shape
    G, t_h = _choose_tiles(N, C, H, W, z.dtype.itemsize)
    grid = (pl.cdiv(N, G), pl.cdiv(H, t_h))

    return pl.pallas_call(
        conv1x1_kernel,
        out_shape=jax.ShapeDtypeStruct((N, C, H, W), z.dtype),
        grid_spec=pltpu.PrefetchScalarGridSpec(
            num_scalar_prefetch=0,
            grid=grid,
            in_specs=[
                # Tiny (C, C) weight lives in SMEM; read as scalars in the kernel.
                pl.BlockSpec(memory_space=pltpu.MemorySpace.SMEM),
                # NCHW block: G batch items x all C channels x t_h rows x full W.
                # t_h (multiple of 8 / full H) on sublanes, W on lanes -> dense
                # (8,128) tiles, and no HBM relayout since the 4-D layout is kept.
                pl.BlockSpec((G, C, t_h, W), lambda i, j: (i, 0, j, 0)),
            ],
            out_specs=pl.BlockSpec((G, C, t_h, W), lambda i, j: (i, 0, j, 0)),
        ),
        compiler_params=pltpu.CompilerParams(
            dimension_semantics=("parallel", "parallel"),
            # Safe on every generation (v5e default scoped is 16 MiB of 128 MiB;
            # v7x physical is 64 MiB). Block budgeting keeps us well under this.
            vmem_limit_bytes=32 * 1024 * 1024,
        ),
        # NOTE: default double-buffering kept; at ~3 MiB blocks DMA latency is not
        # exposed, so pipeline_mode=pl.Buffered(3) is intentionally not used.
    )(weight, z)


# ----------------------------------------------------------------------------
# Parameter / weight construction (plain-JAX glue, mirrors the PyTorch module)
# ----------------------------------------------------------------------------
def build_weight(S, U, v):
    """w = q @ r, exactly as the PyTorch forward builds it."""
    C = S.shape[0]
    I = jnp.eye(C, dtype=S.dtype)
    u_mask = jnp.triu(jnp.ones((C, C), dtype=S.dtype), k=1)
    r = U * u_mask + jnp.diag(S)
    q = I
    for i in range(C):                      # static unroll; tiny CxC chain fuses under jit
        vi = v[i]                           # (C, 1)
        q_i = I - 2.0 * jnp.dot(vi, vi.T, precision=_HI) / jnp.sum(vi * vi)
        q = jnp.dot(q, q_i, precision=_HI)  # same accumulation order as PyTorch: q = q @ q_i
    return jnp.dot(q, r, precision=_HI)


@jax.jit
def invertible_conv1x1_forward(z, logdet, S, U, v):
    """Forward (reverse=False) path of InvertibleConv1x1. z: (N, C, H, W) NCHW."""
    # TODO(synk): reverse=True branch (r^-1 @ q^T inverse conv) not implemented; forward only.
    H, W = z.shape[2], z.shape[3]
    weight = build_weight(S, U, v)          # (C, C)
    z_out = conv1x1_pallas(z, weight)       # == F.conv2d(z, w.view(C, C, 1, 1))
    logdet_out = logdet + jnp.sum(jnp.log(jnp.abs(S))) * (H * W)
    return z_out, logdet_out


# ----------------------------------------------------------------------------
# Main
# ----------------------------------------------------------------------------
if __name__ == "__main__":
    key = jax.random.PRNGKey(0)
    k_z, k_v, k_u, k_s, k_ld = jax.random.split(key, 5)

    N, C, H, W = 2, 4, 16, 16

    # Parameters (non-trivial S/U so the full weight-construction path is exercised).
    S = jnp.ones((C,), jnp.float32) + 0.1 * jax.random.normal(k_s, (C,), jnp.float32)
    U = 0.1 * jax.random.normal(k_u, (C, C), jnp.float32)
    v = jax.random.normal(k_v, (C, C, 1), jnp.float32)

    z = jax.random.normal(k_z, (N, C, H, W), jnp.float32)
    logdet = jax.random.normal(k_ld, (N,), jnp.float32)

    z_out, logdet_out = invertible_conv1x1_forward(z, logdet, S, U, v)
    z_out = jax.block_until_ready(z_out)
    logdet_out = jax.block_until_ready(logdet_out)

    # Sanity check against a plain-JAX reference of the same forward (exact f32).
    w_ref = build_weight(S, U, v)
    z_ref = jnp.einsum("oc,nchw->nohw", w_ref, z, precision=_HI)
    logdet_ref = logdet + jnp.sum(jnp.log(jnp.abs(S))) * (H * W)

    np.testing.assert_allclose(np.asarray(z_out), np.asarray(z_ref), rtol=1e-5, atol=1e-5)
    np.testing.assert_allclose(np.asarray(logdet_out), np.asarray(logdet_ref), rtol=1e-6, atol=1e-6)

    print("KERNEL_OK")
</pallas_src>

<mosaic_0001>
module attributes {stable_mosaic.version = 11 : i64} {
  func.func @conv1x1_kernel(%arg0: i32, %arg1: i32, %arg2: memref<4x4xf32, #tpu.memory_space<smem>>, %arg3: memref<2x4x16x16xf32, #tpu.memory_space<vmem>>, %arg4: memref<2x4x16x16xf32, #tpu.memory_space<vmem>>) attributes {dimension_semantics = [#tpu.dimension_semantics<parallel>, #tpu.dimension_semantics<parallel>], iteration_bounds = array<i64: 1, 1>, scalar_prefetch = 0 : i64, scratch_operands = 0 : i64, tpu.core_type = #tpu.core_type<tc>, window_params = [{transform_indices = @transform_0, window_bounds = array<i64: 4, 4>}, {transform_indices = @transform_1, window_bounds = array<i64: 2, 4, 16, 16>}, {transform_indices = @transform_2, window_bounds = array<i64: 2, 4, 16, 16>}]} {
    %c0 = arith.constant 0 : index
    %c0_0 = arith.constant 0 : index
    %c0_1 = arith.constant 0 : index
    %c0_2 = arith.constant 0 : index
    %0 = vector.load %arg3[%c0, %c0_0, %c0_1, %c0_2] : memref<2x4x16x16xf32, #tpu.memory_space<vmem>>, vector<2x1x16x16xf32>
    %1 = vector.shape_cast %0 : vector<2x1x16x16xf32> to vector<2x16x16xf32>
    %c0_3 = arith.constant 0 : index
    %c0_4 = arith.constant 0 : index
    %2 = memref.load %arg2[%c0_3, %c0_4] : memref<4x4xf32, #tpu.memory_space<smem>>
    %3 = vector.broadcast %2 : f32 to vector<2x16x16xf32>
    %4 = arith.mulf %1, %3 : vector<2x16x16xf32>
    %c0_5 = arith.constant 0 : index
    %c1 = arith.constant 1 : index
    %c0_6 = arith.constant 0 : index
    %c0_7 = arith.constant 0 : index
    %5 = vector.load %arg3[%c0_5, %c1, %c0_6, %c0_7] : memref<2x4x16x16xf32, #tpu.memory_space<vmem>>, vector<2x1x16x16xf32>
    %6 = vector.shape_cast %5 : vector<2x1x16x16xf32> to vector<2x16x16xf32>
    %c0_8 = arith.constant 0 : index
    %c1_9 = arith.constant 1 : index
    %7 = memref.load %arg2[%c0_8, %c1_9] : memref<4x4xf32, #tpu.memory_space<smem>>
    %8 = vector.broadcast %7 : f32 to vector<2x16x16xf32>
    %9 = arith.mulf %6, %8 : vector<2x16x16xf32>
    %10 = arith.addf %4, %9 : vector<2x16x16xf32>
    %c0_10 = arith.constant 0 : index
    %c2 = arith.constant 2 : index
    %c0_11 = arith.constant 0 : index
    %c0_12 = arith.constant 0 : index
    %11 = vector.load %arg3[%c0_10, %c2, %c0_11, %c0_12] : memref<2x4x16x16xf32, #tpu.memory_space<vmem>>, vector<2x1x16x16xf32>
    %12 = vector.shape_cast %11 : vector<2x1x16x16xf32> to vector<2x16x16xf32>
    %c0_13 = arith.constant 0 : index
    %c2_14 = arith.constant 2 : index
    %13 = memref.load %arg2[%c0_13, %c2_14] : memref<4x4xf32, #tpu.memory_space<smem>>
    %14 = vector.broadcast %13 : f32 to vector<2x16x16xf32>
    %15 = arith.mulf %12, %14 : vector<2x16x16xf32>
    %16 = arith.addf %10, %15 : vector<2x16x16xf32>
    %c0_15 = arith.constant 0 : index
    %c3 = arith.constant 3 : index
    %c0_16 = arith.constant 0 : index
    %c0_17 = arith.constant 0 : index
    %17 = vector.load %arg3[%c0_15, %c3, %c0_16, %c0_17] : memref<2x4x16x16xf32, #tpu.memory_space<vmem>>, vector<2x1x16x16xf32>
    %18 = vector.shape_cast %17 : vector<2x1x16x16xf32> to vector<2x16x16xf32>
    %c0_18 = arith.constant 0 : index
    %c3_19 = arith.constant 3 : index
    %19 = memref.load %arg2[%c0_18, %c3_19] : memref<4x4xf32, #tpu.memory_space<smem>>
    %20 = vector.broadcast %19 : f32 to vector<2x16x16xf32>
    %21 = arith.mulf %18, %20 : vector<2x16x16xf32>
    %22 = arith.addf %16, %21 : vector<2x16x16xf32>
    %c0_20 = arith.constant 0 : index
    %c0_21 = arith.constant 0 : index
    %c0_22 = arith.constant 0 : index
    %c0_23 = arith.constant 0 : index
    %23 = vector.load %arg4[%c0_20, %c0_21, %c0_22, %c0_23] : memref<2x4x16x16xf32, #tpu.memory_space<vmem>>, vector<2x1x16x16xf32>
    %24 = vector.shape_cast %23 : vector<2x1x16x16xf32> to vector<2x16x16xf32>
    %25 = vector.shape_cast %22 : vector<2x16x16xf32> to vector<2x1x16x16xf32>
    tpu.vector_store %arg4[%c0_20, %c0_21, %c0_22, %c0_23], %25 {strides = array<i32>} : memref<2x4x16x16xf32, #tpu.memory_space<vmem>>, vector<2x1x16x16xf32>,
    %c0_24 = arith.constant 0 : index
    %c0_25 = arith.constant 0 : index
    %c0_26 = arith.constant 0 : index
    %c0_27 = arith.constant 0 : index
    %26 = vector.load %arg3[%c0_24, %c0_25, %c0_26, %c0_27] : memref<2x4x16x16xf32, #tpu.memory_space<vmem>>, vector<2x1x16x16xf32>
    %27 = vector.shape_cast %26 : vector<2x1x16x16xf32> to vector<2x16x16xf32>
    %c1_28 = arith.constant 1 : index
    %c0_29 = arith.constant 0 : index
    %28 = memref.load %arg2[%c1_28, %c0_29] : memref<4x4xf32, #tpu.memory_space<smem>>
    %29 = vector.broadcast %28 : f32 to vector<2x16x16xf32>
    %30 = arith.mulf %27, %29 : vector<2x16x16xf32>
    %c0_30 = arith.constant 0 : index
    %c1_31 = arith.constant 1 : index
    %c0_32 = arith.constant 0 : index
    %c0_33 = arith.constant 0 : index
    %31 = vector.load %arg3[%c0_30, %c1_31, %c0_32, %c0_33] : memref<2x4x16x16xf32, #tpu.memory_space<vmem>>, vector<2x1x16x16xf32>
    %32 = vector.shape_cast %31 : vector<2x1x16x16xf32> to vector<2x16x16xf32>
    %c1_34 = arith.constant 1 : index
    %c1_35 = arith.constant 1 : index
    %33 = memref.load %arg2[%c1_34, %c1_35] : memref<4x4xf32, #tpu.memory_space<smem>>
    %34 = vector.broadcast %33 : f32 to vector<2x16x16xf32>
    %35 = arith.mulf %32, %34 : vector<2x16x16xf32>
    %36 = arith.addf %30, %35 : vector<2x16x16xf32>
    %c0_36 = arith.constant 0 : index
    %c2_37 = arith.constant 2 : index
    %c0_38 = arith.constant 0 : index
    %c0_39 = arith.constant 0 : index
    %37 = vector.load %arg3[%c0_36, %c2_37, %c0_38, %c0_39] : memref<2x4x16x16xf32, #tpu.memory_space<vmem>>, vector<2x1x16x16xf32>
    %38 = vector.shape_cast %37 : vector<2x1x16x16xf32> to vector<2x16x16xf32>
    %c1_40 = arith.constant 1 : index
    %c2_41 = arith.constant 2 : index
    %39 = memref.load %arg2[%c1_40, %c2_41] : memref<4x4xf32, #tpu.memory_space<smem>>
    %40 = vector.broadcast %39 : f32 to vector<2x16x16xf32>
    %41 = arith.mulf %38, %40 : vector<2x16x16xf32>
    %42 = arith.addf %36, %41 : vector<2x16x16xf32>
    %c0_42 = arith.constant 0 : index
    %c3_43 = arith.constant 3 : index
    %c0_44 = arith.constant 0 : index
    %c0_45 = arith.constant 0 : index
    %43 = vector.load %arg3[%c0_42, %c3_43, %c0_44, %c0_45] : memref<2x4x16x16xf32, #tpu.memory_space<vmem>>, vector<2x1x16x16xf32>
    %44 = vector.shape_cast %43 : vector<2x1x16x16xf32> to vector<2x16x16xf32>
    %c1_46 = arith.constant 1 : index
    %c3_47 = arith.constant 3 : index
    %45 = memref.load %arg2[%c1_46, %c3_47] : memref<4x4xf32, #tpu.memory_space<smem>>
    %46 = vector.broadcast %45 : f32 to vector<2x16x16xf32>
    %47 = arith.mulf %44, %46 : vector<2x16x16xf32>
    %48 = arith.addf %42, %47 : vector<2x16x16xf32>
    %c0_48 = arith.constant 0 : index
    %c1_49 = arith.constant 1 : index
    %c0_50 = arith.constant 0 : index
    %c0_51 = arith.constant 0 : index
    %49 = vector.load %arg4[%c0_48, %c1_49, %c0_50, %c0_51] : memref<2x4x16x16xf32, #tpu.memory_space<vmem>>, vector<2x1x16x16xf32>
    %50 = vector.shape_cast %49 : vector<2x1x16x16xf32> to vector<2x16x16xf32>
    %51 = vector.shape_cast %48 : vector<2x16x16xf32> to vector<2x1x16x16xf32>
    tpu.vector_store %arg4[%c0_48, %c1_49, %c0_50, %c0_51], %51 {strides = array<i32>} : memref<2x4x16x16xf32, #tpu.memory_space<vmem>>, vector<2x1x16x16xf32>,
    %c0_52 = arith.constant 0 : index
    %c0_53 = arith.constant 0 : index
    %c0_54 = arith.constant 0 : index
    %c0_55 = arith.constant 0 : index
    %52 = vector.load %arg3[%c0_52, %c0_53, %c0_54, %c0_55] : memref<2x4x16x16xf32, #tpu.memory_space<vmem>>, vector<2x1x16x16xf32>
    %53 = vector.shape_cast %52 : vector<2x1x16x16xf32> to vector<2x16x16xf32>
    %c2_56 = arith.constant 2 : index
    %c0_57 = arith.constant 0 : index
    %54 = memref.load %arg2[%c2_56, %c0_57] : memref<4x4xf32, #tpu.memory_space<smem>>
    %55 = vector.broadcast %54 : f32 to vector<2x16x16xf32>
    %56 = arith.mulf %53, %55 : vector<2x16x16xf32>
    %c0_58 = arith.constant 0 : index
    %c1_59 = arith.constant 1 : index
    %c0_60 = arith.constant 0 : index
    %c0_61 = arith.constant 0 : index
    %57 = vector.load %arg3[%c0_58, %c1_59, %c0_60, %c0_61] : memref<2x4x16x16xf32, #tpu.memory_space<vmem>>, vector<2x1x16x16xf32>
    %58 = vector.shape_cast %57 : vector<2x1x16x16xf32> to vector<2x16x16xf32>
    %c2_62 = arith.constant 2 : index
    %c1_63 = arith.constant 1 : index
    %59 = memref.load %arg2[%c2_62, %c1_63] : memref<4x4xf32, #tpu.memory_space<smem>>
    %60 = vector.broadcast %59 : f32 to vector<2x16x16xf32>
    %61 = arith.mulf %58, %60 : vector<2x16x16xf32>
    %62 = arith.addf %56, %61 : vector<2x16x16xf32>
    %c0_64 = arith.constant 0 : index
    %c2_65 = arith.constant 2 : index
    %c0_66 = arith.constant 0 : index
    %c0_67 = arith.constant 0 : index
    %63 = vector.load %arg3[%c0_64, %c2_65, %c0_66, %c0_67] : memref<2x4x16x16xf32, #tpu.memory_space<vmem>>, vector<2x1x16x16xf32>
    %64 = vector.shape_cast %63 : vector<2x1x16x16xf32> to vector<2x16x16xf32>
    %c2_68 = arith.constant 2 : index
    %c2_69 = arith.constant 2 : index
    %65 = memref.load %arg2[%c2_68, %c2_69] : memref<4x4xf32, #tpu.memory_space<smem>>
    %66 = vector.broadcast %65 : f32 to vector<2x16x16xf32>
    %67 = arith.mulf %64, %66 : vector<2x16x16xf32>
    %68 = arith.addf %62, %67 : vector<2x16x16xf32>
    %c0_70 = arith.constant 0 : index
    %c3_71 = arith.constant 3 : index
    %c0_72 = arith.constant 0 : index
    %c0_73 = arith.constant 0 : index
    %69 = vector.load %arg3[%c0_70, %c3_71, %c0_72, %c0_73] : memref<2x4x16x16xf32, #tpu.memory_space<vmem>>, vector<2x1x16x16xf32>
    %70 = vector.shape_cast %69 : vector<2x1x16x16xf32> to vector<2x16x16xf32>
    %c2_74 = arith.constant 2 : index
    %c3_75 = arith.constant 3 : index
    %71 = memref.load %arg2[%c2_74, %c3_75] : memref<4x4xf32, #tpu.memory_space<smem>>
    %72 = vector.broadcast %71 : f32 to vector<2x16x16xf32>
    %73 = arith.mulf %70, %72 : vector<2x16x16xf32>
    %74 = arith.addf %68, %73 : vector<2x16x16xf32>
    %c0_76 = arith.constant 0 : index
    %c2_77 = arith.constant 2 : index
    %c0_78 = arith.constant 0 : index
    %c0_79 = arith.constant 0 : index
    %75 = vector.load %arg4[%c0_76, %c2_77, %c0_78, %c0_79] : memref<2x4x16x16xf32, #tpu.memory_space<vmem>>, vector<2x1x16x16xf32>
    %76 = vector.shape_cast %75 : vector<2x1x16x16xf32> to vector<2x16x16xf32>
    %77 = vector.shape_cast %74 : vector<2x16x16xf32> to vector<2x1x16x16xf32>
    tpu.vector_store %arg4[%c0_76, %c2_77, %c0_78, %c0_79], %77 {strides = array<i32>} : memref<2x4x16x16xf32, #tpu.memory_space<vmem>>, vector<2x1x16x16xf32>,
    %c0_80 = arith.constant 0 : index
    %c0_81 = arith.constant 0 : index
    %c0_82 = arith.constant 0 : index
    %c0_83 = arith.constant 0 : index
    %78 = vector.load %arg3[%c0_80, %c0_81, %c0_82, %c0_83] : memref<2x4x16x16xf32, #tpu.memory_space<vmem>>, vector<2x1x16x16xf32>
    %79 = vector.shape_cast %78 : vector<2x1x16x16xf32> to vector<2x16x16xf32>
    %c3_84 = arith.constant 3 : index
    %c0_85 = arith.constant 0 : index
    %80 = memref.load %arg2[%c3_84, %c0_85] : memref<4x4xf32, #tpu.memory_space<smem>>
    %81 = vector.broadcast %80 : f32 to vector<2x16x16xf32>
    %82 = arith.mulf %79, %81 : vector<2x16x16xf32>
    %c0_86 = arith.constant 0 : index
    %c1_87 = arith.constant 1 : index
    %c0_88 = arith.constant 0 : index
    %c0_89 = arith.constant 0 : index
    %83 = vector.load %arg3[%c0_86, %c1_87, %c0_88, %c0_89] : memref<2x4x16x16xf32, #tpu.memory_space<vmem>>, vector<2x1x16x16xf32>
    %84 = vector.shape_cast %83 : vector<2x1x16x16xf32> to vector<2x16x16xf32>
    %c3_90 = arith.constant 3 : index
    %c1_91 = arith.constant 1 : index
    %85 = memref.load %arg2[%c3_90, %c1_91] : memref<4x4xf32, #tpu.memory_space<smem>>
    %86 = vector.broadcast %85 : f32 to vector<2x16x16xf32>
    %87 = arith.mulf %84, %86 : vector<2x16x16xf32>
    %88 = arith.addf %82, %87 : vector<2x16x16xf32>
    %c0_92 = arith.constant 0 : index
    %c2_93 = arith.constant 2 : index
    %c0_94 = arith.constant 0 : index
    %c0_95 = arith.constant 0 : index
    %89 = vector.load %arg3[%c0_92, %c2_93, %c0_94, %c0_95] : memref<2x4x16x16xf32, #tpu.memory_space<vmem>>, vector<2x1x16x16xf32>
    %90 = vector.shape_cast %89 : vector<2x1x16x16xf32> to vector<2x16x16xf32>
    %c3_96 = arith.constant 3 : index
    %c2_97 = arith.constant 2 : index
    %91 = memref.load %arg2[%c3_96, %c2_97] : memref<4x4xf32, #tpu.memory_space<smem>>
    %92 = vector.broadcast %91 : f32 to vector<2x16x16xf32>
    %93 = arith.mulf %90, %92 : vector<2x16x16xf32>
    %94 = arith.addf %88, %93 : vector<2x16x16xf32>
    %c0_98 = arith.constant 0 : index
    %c3_99 = arith.constant 3 : index
    %c0_100 = arith.constant 0 : index
    %c0_101 = arith.constant 0 : index
    %95 = vector.load %arg3[%c0_98, %c3_99, %c0_100, %c0_101] : memref<2x4x16x16xf32, #tpu.memory_space<vmem>>, vector<2x1x16x16xf32>
    %96 = vector.shape_cast %95 : vector<2x1x16x16xf32> to vector<2x16x16xf32>
    %c3_102 = arith.constant 3 : index
    %c3_103 = arith.constant 3 : index
    %97 = memref.load %arg2[%c3_102, %c3_103] : memref<4x4xf32, #tpu.memory_space<smem>>
    %98 = vector.broadcast %97 : f32 to vector<2x16x16xf32>
    %99 = arith.mulf %96, %98 : vector<2x16x16xf32>
    %100 = arith.addf %94, %99 : vector<2x16x16xf32>
    %c0_104 = arith.constant 0 : index
    %c3_105 = arith.constant 3 : index
    %c0_106 = arith.constant 0 : index
    %c0_107 = arith.constant 0 : index
    %101 = vector.load %arg4[%c0_104, %c3_105, %c0_106, %c0_107] : memref<2x4x16x16xf32, #tpu.memory_space<vmem>>, vector<2x1x16x16xf32>
    %102 = vector.shape_cast %101 : vector<2x1x16x16xf32> to vector<2x16x16xf32>
    %103 = vector.shape_cast %100 : vector<2x16x16xf32> to vector<2x1x16x16xf32>
    tpu.vector_store %arg4[%c0_104, %c3_105, %c0_106, %c0_107], %103 {strides = array<i32>} : memref<2x4x16x16xf32, #tpu.memory_space<vmem>>, vector<2x1x16x16xf32>,
    return
  }
  func.func @transform_0(%arg0: i32, %arg1: i32) -> (i32, i32) {
    %c0_i32 = arith.constant 0 : i32
    %c0_i32_0 = arith.constant 0 : i32
    %c0_i32_1 = arith.constant 0 : i32
    return %c0_i32, %c0_i32_0 : i32, i32
  }
  func.func @transform_1(%arg0: i32, %arg1: i32) -> (i32, i32, i32, i32) {
    %c0_i32 = arith.constant 0 : i32
    %c0_i32_0 = arith.constant 0 : i32
    %c0_i32_1 = arith.constant 0 : i32
    return %arg0, %c0_i32, %arg1, %c0_i32_0 : i32, i32, i32, i32
  }
  func.func @transform_2(%arg0: i32, %arg1: i32) -> (i32, i32, i32, i32) {
    %c0_i32 = arith.constant 0 : i32
    %c0_i32_0 = arith.constant 0 : i32
    %c0_i32_1 = arith.constant 0 : i32
    return %arg0, %c0_i32, %arg1, %c0_i32_0 : i32, i32, i32, i32
  }
}

</mosaic_0001>

<bundles_post_ra>
// kernel: invertible_conv1x1_forward.1
= control target key start
LH: loop header
LB: loop body
LE: loop exit
PB: predicated region body
PF: predicated region fallthrough
CT: control target
= control target key end

     0   :  { %7 = vsyncpa [#allocation4], 0  ;;  %s608_s0 = inlined_call_operand.vmem [shape: f32[4,4], index: 0, kind: input, shape index: {}]   ;;  %s609_s1 = inlined_call_operand.vmem [shape: f32[2,4,16,16], index: 1, kind: input, shape index: {}]   ;;  %s610_s2 = inlined_call_operand.hbm [shape: f32[2,4,16,16], index: 2, kind: output, shape index: {}]  }
   0x1   :  { %8 = vsyncpa [#allocation3], 0  ;;  %s15_s11 = sshll.u32 %s608_s0, 4  ;;  %s16_s11 = int_to_ptr.vmem [resolvable:$true] %s15_s11 }
   0x2   :  { %s340_s12 = scalar_lea.vmem %s16_s11, 64  ;;  %p345_p1 = scmp.lt.s32.totalorder %s16_s11, %s16_s11 }
   0x3   :  { %p341_p0 = scmp.ne.s32.totalorder %s16_s11, %s340_s12  ;;  %p346_p2 = scmp.lt.s32.totalorder %s340_s12, %s340_s12 }
   0x5   :  { %p347_p3 = por %p346_p2, %p345_p1 }
   0x7   :  { %p348_p4 = pnand %p347_p3, %p341_p0 }
   0x9   :  { %351 = shalt.err (!%p348_p4)
}
   0xa   :  { %s378_s13 = smov [#allocation2]  }
   0xb   :  { %18 = dma.vmem_to_smem %s16_s11, 64, %s378_s13, [#allocation4]  }
   0xc   :  { %374 = dma.done.wait [#allocation4], 64  }
   0xd   :  { %375 = vsyncadd [#allocation4], 4294967232 }
   0xe   :  { %24 = sfence }
   0xf   :  { %s29_s14 = sld [smem:[#allocation2]]  ;;  %s277_s15 = sld [smem:[#allocation2 + $0x1]]  ;;  %v403_v0 = vld [vmem:[%s609_s1] sm:$0xff]  ;;  %v408_v1 = vld [vmem:[%s609_s1 + $0x10] sm:$0xff]  ;;  %v423_v4 = vld [vmem:[%s609_s1 + $0x8] sm:$0xff]  ;;  %vm80_vm0 = vcmask 130048  }
  0x10   :  { %s282_s16 = sld [smem:[#allocation2 + $0x2]]  ;;  %s287_s17 = sld [smem:[#allocation2 + $0x3]]  ;;  %v413_v2 = vld [vmem:[%s609_s1 + $0x20] sm:$0xff]  ;;  %v418_v3 = vld [vmem:[%s609_s1 + $0x30] sm:$0xff]  ;;  %v430_v5 = vld [vmem:[%s609_s1 + $0x18] sm:$0xff] }
  0x11   :  { %s425_s27 = sld [smem:[#allocation2 + $0x80]]  ;;  %v435_v6 = vld [vmem:[%s609_s1 + $0x28] sm:$0xff]  ;;  %v440_v7 = vld [vmem:[%s609_s1 + $0x38] sm:$0xff]  ;;  %s442_s6 = sld [smem:[#allocation2 + $0x81]]  ;;  %v447_v10 = vld [vmem:[%s609_s1 + $0x40] sm:$0xff] }
  0x12   :  { %v452_v11 = vld [vmem:[%s609_s1 + $0x50] sm:$0xff]  ;;  %s454_s11 = sld [smem:[#allocation2 + $0x82]]  ;;  %v461_v16 = vld [vmem:[%s609_s1 + $0x60] sm:$0xff]  ;;  %s468_s18 = sld [smem:[#allocation2 + $0x83]]  ;;  %v477_v22 = vld [vmem:[%s609_s1 + $0x48] sm:$0xff] }
  0x13   :  { %v466_v17 = vld [vmem:[%s609_s1 + $0x70] sm:$0xff]  ;;  %v482_v23 = vld [vmem:[%s609_s1 + $0x58] sm:$0xff]  ;;  %v487_v24 = vld [vmem:[%s609_s1 + $0x68] sm:$0xff]  ;;  %s509_s24 = sld [smem:[#allocation2 + $0x101]]  ;;  %s511_s25 = sld [smem:[#allocation2 + $0x102]] }
  0x14   :  { %v495_v29 = vld [vmem:[%s609_s1 + $0x78] sm:$0xff]  ;;  %s505_s1 = sld [smem:[#allocation2 + $0x100]]  ;;  %s519_s26 = sld [smem:[#allocation2 + $0x103]] }
  0x15   :  { %v30_v8 = vstv %s29_s14  ;;  %v41_v9 = vstv %s277_s15  ;;  %s541_s28 = sld [smem:[#allocation2 + $0x181]]  ;;  %s543_s29 = sld [smem:[#allocation2 + $0x182]] }
  0x16   :  { %v31_v12 = vmul.f32 %v30_v8, %v403_v0  ;;  %v42_v13 = vmul.f32 %v408_v1, %v41_v9  ;;  %v56_v14 = vstv %s282_s16  ;;  %v71_v15 = vstv %s287_s17  ;;  %s551_s30 = sld [smem:[#allocation2 + $0x183]]  ;;  %s379_s3 = smov [#allocation5]  }
  0x17   :  { %v57_v18 = vmul.f32 %v413_v2, %v56_v14  ;;  %v72_v19 = vmul.f32 %v418_v3, %v71_v15  ;;  %v32_v20 = vmul.f32 %v30_v8, %v423_v4  ;;  %v43_v21 = vmul.f32 %v430_v5, %v41_v9  ;;  %s261_s4 = sshll.u32 %s379_s3, 4  ;;  %s262_s4 = int_to_ptr.vmem [resolvable:$true] %s261_s4 }
  0x18   :  { %v46_v25 = vadd.f32 %v42_v13, %v31_v12  ;;  %v58_v26 = vmul.f32 %v435_v6, %v56_v14  ;;  %v73_v27 = vmul.f32 %v440_v7, %v71_v15  ;;  %v33_v28 = vmul.f32 %v30_v8, %v447_v10  ;;  %s352_s5 = scalar_lea.vmem %s262_s4, 2048  ;;  %p357_p6 = scmp.lt.s32.totalorder %s262_s4, %s262_s4 }
  0x19   :  { %v47_v30 = vadd.f32 %v43_v21, %v32_v20  ;;  %v44_v31 = vmul.f32 %v452_v11, %v41_v9  ;;  %v59_v32 = vmul.f32 %v461_v16, %v56_v14  ;;  %v74_v33 = vmul.f32 %v466_v17, %v71_v15  ;;  %p353_p5 = scmp.ne.s32.totalorder %s262_s4, %s352_s5  ;;  %p358_p7 = scmp.lt.s32.totalorder %s352_s5, %s352_s5 }
  0x1a   :  { %v61_v34 = vadd.f32 %v57_v18, %v46_v25  ;;  %v34_v35 = vmul.f32 %v30_v8, %v477_v22  ;;  %v45_v36 = vmul.f32 %v482_v23, %v41_v9  ;;  %v60_v37 = vmul.f32 %v487_v24, %v56_v14 }
  0x1b   :  { %v62_v38 = vadd.f32 %v58_v26, %v47_v30  ;;  %v48_v39 = vadd.f32 %v44_v31, %v33_v28  ;;  %v75_v40 = vmul.f32 %v495_v29, %v71_v15  ;;  %v90_v41 = vstv %s425_s27  ;;  %s536_s27 = sld [smem:[#allocation2 + $0x180]]  ;;  %p359_p8 = por %p358_p7, %p357_p6 }
  0x1c   :  { %v76_v42 = vadd.f32 %v72_v19, %v61_v34  ;;  %v49_v43 = vadd.f32 %v45_v36, %v34_v35  ;;  %v91_v44 = vmul.f32 %v90_v41, %v403_v0  ;;  %v100_v45 = vstv %s442_s6 }
  0x1d   :  { %v77_v46 = vadd.f32 %v73_v27, %v62_v38  ;;  %v63_v47 = vadd.f32 %v59_v32, %v48_v39  ;;  %v101_v48 = vmul.f32 %v408_v1, %v100_v45  ;;  %v114_v49 = vstv %s454_s11  ;;  %p360_p9 = pnand %p359_p8, %p353_p5 }
  0x1e   :  { %81 = vst.msk [vmem:[#allocation5] sm:$0xff] %vm80_vm0, %v76_v42  ;;  %v64_v50 = vadd.f32 %v60_v37, %v49_v43  ;;  %v115_v51 = vmul.f32 %v413_v2, %v114_v49  ;;  %v128_v52 = vstv %s468_s18  ;;  %v92_v53 = vmul.f32 %v90_v41, %v423_v4 }
  0x1f   :  { %82 = vst.msk [vmem:[#allocation5 + $0x8] sm:$0xff] %vm80_vm0, %v77_v46  ;;  %v78_v54 = vadd.f32 %v74_v33, %v63_v47  ;;  %v105_v55 = vadd.f32 %v101_v48, %v91_v44  ;;  %v129_v56 = vmul.f32 %v418_v3, %v128_v52  ;;  %v102_v57 = vmul.f32 %v430_v5, %v100_v45 }
  0x20   :  { %v79_v58 = vadd.f32 %v75_v40, %v64_v50  ;;  %v116_v59 = vmul.f32 %v435_v6, %v114_v49  ;;  %v130_v60 = vmul.f32 %v440_v7, %v128_v52  ;;  %v93_v61 = vmul.f32 %v90_v41, %v447_v10 }
  0x21   :  { %83 = vst.msk [vmem:[#allocation5 + $0x40] sm:$0xff] %vm80_vm0, %v78_v54  ;;  %v119_v62 = vadd.f32 %v115_v51, %v105_v55  ;;  %v106_v63 = vadd.f32 %v102_v57, %v92_v53  ;;  %v103_v8 = vmul.f32 %v452_v11, %v100_v45  ;;  %v117_v9 = vmul.f32 %v461_v16, %v114_v49 }
  0x22   :  { %84 = vst.msk [vmem:[#allocation5 + $0x48] sm:$0xff] %vm80_vm0, %v79_v58  ;;  %v131_v12 = vmul.f32 %v466_v17, %v128_v52  ;;  %v94_v13 = vmul.f32 %v90_v41, %v477_v22  ;;  %v104_v14 = vmul.f32 %v482_v23, %v100_v45  ;;  %v118_v15 = vmul.f32 %v487_v24, %v114_v49 }
  0x23   :  { %v133_v18 = vadd.f32 %v129_v56, %v119_v62  ;;  %v120_v19 = vadd.f32 %v116_v59, %v106_v63  ;;  %v107_v20 = vadd.f32 %v103_v8, %v93_v61  ;;  %v132_v21 = vmul.f32 %v495_v29, %v128_v52 }
  0x24   :  { %v108_v25 = vadd.f32 %v104_v14, %v94_v13  ;;  %v147_v26 = vstv %s505_s1  ;;  %v157_v27 = vstv %s509_s24  ;;  %v171_v28 = vstv %s511_s25 }
  0x25   :  { %138 = vst.msk [vmem:[#allocation5 + $0x10] sm:$0xff] %vm80_vm0, %v133_v18  ;;  %v134_v30 = vadd.f32 %v130_v60, %v120_v19  ;;  %v121_v31 = vadd.f32 %v117_v9, %v107_v20  ;;  %v148_v32 = vmul.f32 %v147_v26, %v403_v0  ;;  %v158_v33 = vmul.f32 %v408_v1, %v157_v27 }
  0x26   :  { %v122_v34 = vadd.f32 %v118_v15, %v108_v25  ;;  %v172_v35 = vmul.f32 %v413_v2, %v171_v28  ;;  %v185_v36 = vstv %s519_s26  ;;  %v149_v37 = vmul.f32 %v147_v26, %v423_v4 }
  0x27   :  { %139 = vst.msk [vmem:[#allocation5 + $0x18] sm:$0xff] %vm80_vm0, %v134_v30  ;;  %v135_v38 = vadd.f32 %v131_v12, %v121_v31  ;;  %v162_v39 = vadd.f32 %v158_v33, %v148_v32  ;;  %v186_v40 = vmul.f32 %v418_v3, %v185_v36  ;;  %v159_v41 = vmul.f32 %v430_v5, %v157_v27 }
  0x28   :  { %v136_v42 = vadd.f32 %v132_v21, %v122_v34  ;;  %v173_v43 = vmul.f32 %v435_v6, %v171_v28  ;;  %v187_v44 = vmul.f32 %v440_v7, %v185_v36  ;;  %v150_v45 = vmul.f32 %v147_v26, %v447_v10 }
  0x29   :  { %140 = vst.msk [vmem:[#allocation5 + $0x50] sm:$0xff] %vm80_vm0, %v135_v38  ;;  %v176_v46 = vadd.f32 %v172_v35, %v162_v39  ;;  %v163_v47 = vadd.f32 %v159_v41, %v149_v37  ;;  %v160_v48 = vmul.f32 %v452_v11, %v157_v27  ;;  %v174_v49 = vmul.f32 %v461_v16, %v171_v28 }
  0x2a   :  { %141 = vst.msk [vmem:[#allocation5 + $0x58] sm:$0xff] %vm80_vm0, %v136_v42  ;;  %v188_v50 = vmul.f32 %v466_v17, %v185_v36  ;;  %v151_v51 = vmul.f32 %v147_v26, %v477_v22  ;;  %v161_v52 = vmul.f32 %v482_v23, %v157_v27  ;;  %v175_v53 = vmul.f32 %v487_v24, %v171_v28 }
  0x2b   :  { %v190_v54 = vadd.f32 %v186_v40, %v176_v46  ;;  %v177_v55 = vadd.f32 %v173_v43, %v163_v47  ;;  %v164_v56 = vadd.f32 %v160_v48, %v150_v45  ;;  %v189_v57 = vmul.f32 %v495_v29, %v185_v36 }
  0x2c   :  { %v165_v58 = vadd.f32 %v161_v52, %v151_v51  ;;  %v204_v59 = vstv %s536_s27  ;;  %v214_v60 = vstv %s541_s28  ;;  %v228_v61 = vstv %s543_s29 }
  0x2d   :  { %195 = vst.msk [vmem:[#allocation5 + $0x20] sm:$0xff] %vm80_vm0, %v190_v54  ;;  %v191_v62 = vadd.f32 %v187_v44, %v177_v55  ;;  %v178_v63 = vadd.f32 %v174_v49, %v164_v56  ;;  %v205_v8 = vmul.f32 %v204_v59, %v403_v0  ;;  %v215_v9 = vmul.f32 %v408_v1, %v214_v60 }
  0x2e   :  { %v179_v12 = vadd.f32 %v175_v53, %v165_v58  ;;  %v229_v13 = vmul.f32 %v413_v2, %v228_v61  ;;  %v242_v14 = vstv %s551_s30  ;;  %v206_v15 = vmul.f32 %v204_v59, %v423_v4 }
  0x2f   :  { %196 = vst.msk [vmem:[#allocation5 + $0x28] sm:$0xff] %vm80_vm0, %v191_v62  ;;  %v192_v18 = vadd.f32 %v188_v50, %v178_v63  ;;  %v219_v19 = vadd.f32 %v215_v9, %v205_v8  ;;  %v243_v20 = vmul.f32 %v418_v3, %v242_v14  ;;  %v216_v21 = vmul.f32 %v430_v5, %v214_v60 }
  0x30   :  { %v193_v25 = vadd.f32 %v189_v57, %v179_v12  ;;  %v230_v26 = vmul.f32 %v435_v6, %v228_v61  ;;  %v244_v0 = vmul.f32 %v440_v7, %v242_v14  ;;  %v207_v1 = vmul.f32 %v204_v59, %v447_v10 }
  0x31   :  { %197 = vst.msk [vmem:[#allocation5 + $0x60] sm:$0xff] %vm80_vm0, %v192_v18  ;;  %v233_v2 = vadd.f32 %v229_v13, %v219_v19  ;;  %v220_v27 = vadd.f32 %v216_v21, %v206_v15  ;;  %v217_v4 = vmul.f32 %v452_v11, %v214_v60  ;;  %v231_v28 = vmul.f32 %v461_v16, %v228_v61 }
  0x32   :  { %198 = vst.msk [vmem:[#allocation5 + $0x68] sm:$0xff] %vm80_vm0, %v193_v25  ;;  %v208_v3 = vmul.f32 %v204_v59, %v477_v22  ;;  %v218_v5 = vmul.f32 %v482_v23, %v214_v60  ;;  %v232_v6 = vmul.f32 %v487_v24, %v228_v61  ;;  %v245_v10 = vmul.f32 %v466_v17, %v242_v14 }
  0x33   :  { %v247_v30 = vadd.f32 %v243_v20, %v233_v2  ;;  %v234_v7 = vadd.f32 %v230_v26, %v220_v27  ;;  %v221_v31 = vadd.f32 %v217_v4, %v207_v1  ;;  %v246_v33 = vmul.f32 %v495_v29, %v242_v14 }
  0x34   :  { %v222_v32 = vadd.f32 %v218_v5, %v208_v3 }
  0x35   :  { %252 = vst.msk [vmem:[#allocation5 + $0x30] sm:$0xff] %vm80_vm0, %v247_v30  ;;  %v248_v11 = vadd.f32 %v244_v0, %v234_v7  ;;  %v235_v16 = vadd.f32 %v231_v28, %v221_v31 }
  0x36   :  { %v236_v34 = vadd.f32 %v232_v6, %v222_v32 }
  0x37   :  { %253 = vst.msk [vmem:[#allocation5 + $0x38] sm:$0xff] %vm80_vm0, %v248_v11  ;;  %v249_v22 = vadd.f32 %v245_v10, %v235_v16 }
  0x38   :  { %v250_v23 = vadd.f32 %v246_v33, %v236_v34 }
  0x39   :  { %254 = vst.msk [vmem:[#allocation5 + $0x70] sm:$0xff] %vm80_vm0, %v249_v22 }
  0x3a   :  { %255 = vst.msk [vmem:[#allocation5 + $0x78] sm:$0xff] %vm80_vm0, %v250_v23 }
  0x3b   :  { %363 = shalt.err (!%p360_p9)
}
  0x3c   :  { %s364_s8 = scalar_lea.hbm %s610_s2, 2048 }
  0x3d   :  { %p365_p10 = scmp.ne.s32.totalorder %s610_s2, %s364_s8  ;;  %p368_p11 = scmp.lt.u32.totalorder %s364_s8, %s610_s2 }
  0x3f   :  { %p370_p12 = pnand %p368_p11, %p365_p10 }
  0x41   :  { %373 = shalt.err (!%p370_p12)
}
  0x42   :  { %s380_s13 = smov 128   ;;  %s381_s14 = smov 8  }
  0x43   :  { %267 = dma.vmem_to_hbm [thread:$0]  %s262_s4, 2048, %s610_s2, [#allocation3], %s380_s13, %s380_s13, %s381_s14  }
  0x44   :  { %376 = dma.done.wait [#allocation3], 2048  }
  0x45   :  { %377 = vsyncadd [#allocation3], 4294965248 }
  0x46   :  { %271 = vsyncpa [#allocation3], 1 }
  0x47   :  { %272 = vsyncpa [#allocation4], 1 }

</bundles_post_ra>
